<compile_context>
chip_gen: v5e
topology: v5e:2x2
jax: 0.10.0
libtpu: 0.0.40
codegen_flags: <defaults>
</compile_context>

<pallas_src>
import numpy as np
import jax
import jax.numpy as jnp
from jax import lax
from jax.experimental import pallas as pl
from jax.experimental.pallas import tpu as pltpu

S3GEN_SR = 24000
S3_SR = 16000

# --- logical (unpadded) dims of the small synthetic surrogate ---
VOCAB     = 64
TOK_DIM   = 32
ENC_HID   = 64
MEL_DIM   = 80            # real out_channels of the CFM estimator
UPSAMPLE  = 2             # token rate -> mel rate (25 Hz tokens -> 50 Hz mel)
WAV_HID   = 128
HOP       = 120           # HiFT upsample_rates 8*5*3
CFM_STEPS = 4             # euler solver steps
N_TRIM    = S3GEN_SR // 50            # 480 -> trim_fade has length 960 (= 8 frames)

# --- lane-padded dims: every matmul K/N padded to 128 (zero padding, exact math) ---
LANE     = 128
TOK_PAD  = 128
ENC_PAD  = 128
MEL_PAD  = 128
HOP_PAD  = 128

MAX_TILE_L  = 256                     # rows per grid step; fits v7x 32 MiB scoped VMEM easily
FADE_FRAMES = (2 * N_TRIM + HOP - 1) // HOP     # = 8 frames carry the whole trim_fade


def _round_up(x, m):
    return ((x + m - 1) // m) * m


# ---------------------------------------------------------------------------
# Fused Pallas kernel: encoder MLP + hoisted conditioning + euler CFM + mel->wav + fade
# ---------------------------------------------------------------------------

def _s3_fused_kernel(emb_ref, x0_ref, fade_ref,
                     enc_w1_ref, enc_b1_ref, enc_w2_ref, enc_b2_ref,
                     w_mu_ref, spk_c_ref, w_x_ref,
                     mel_w1_ref, mel_b1_ref, wav_w_ref,
                     frames_ref):
    f32, bf16 = jnp.float32, jnp.bfloat16

    # --- UpsampleConformerEncoder surrogate: 2-layer MLP on upsampled token embeddings ---
    emb = emb_ref[...].astype(bf16)
    h = jnp.dot(emb, enc_w1_ref[...], preferred_element_type=f32) + enc_b1_ref[...]
    h = jnp.maximum(h, 0.0)
    mu = jnp.dot(h.astype(bf16), enc_w2_ref[...], preferred_element_type=f32) + enc_b2_ref[...]

    # --- loop-invariant estimator conditioning, hoisted out of the euler loop:
    #     pre = mu @ W_mu + (spk @ W_spk + b).  The prompt/cond 80-column block of the
    #     estimator multiplies an all-zero prompt_feat and is dropped entirely. ---
    pre = jnp.dot(mu.astype(bf16), w_mu_ref[...], preferred_element_type=f32) + spk_c_ref[...]

    # --- CausalConditionalCFM euler solver; x stays resident in VMEM/vregs (f32) ---
    dt = jnp.float32(1.0 / CFM_STEPS)
    w_x = w_x_ref[...]

    def _euler_step(_, x):
        v = jnp.tanh(jnp.dot(x.astype(bf16), w_x, preferred_element_type=f32) + pre)
        return x + dt * v

    mels = lax.fori_loop(0, CFM_STEPS, _euler_step, x0_ref[...], unroll=True)

    # --- HiFTGenerator surrogate: mel -> hidden -> HOP waveform samples per frame ---
    hh = jnp.dot(mels.astype(bf16), mel_w1_ref[...], preferred_element_type=f32) + mel_b1_ref[...]
    hh = jnp.maximum(hh, 0.0)
    frames = jnp.tanh(jnp.dot(hh.astype(bf16), wav_w_ref[...], preferred_element_type=f32))

    # --- trim_fade: only the first 960 samples (= first 8 frames, i.e. grid tile 0) ---
    @pl.when(pl.program_id(0) == 0)
    def _():
        frames_ref[...] = frames * fade_ref[...]

    @pl.when(pl.program_id(0) != 0)
    def _():
        frames_ref[...] = frames


def _fused_pallas(p, emb_up_pad, x0_pad, spk_c, fade_tile, tile_l):
    L_pad = emb_up_pad.shape[0]
    grid = (L_pad // tile_l,)

    def row_spec(cols):
        return pl.BlockSpec((tile_l, cols), lambda i: (i, 0))

    def full_spec(a):
        return pl.BlockSpec(a.shape, lambda i: (0, 0))

    weights = (p["enc_w1"], p["enc_b1"], p["enc_w2"], p["enc_b2"],
               p["est_w_mu"], spk_c, p["est_w_x"],
               p["mel_w1"], p["mel_b1"], p["wav_w"])

    return pl.pallas_call(
        _s3_fused_kernel,
        out_shape=jax.ShapeDtypeStruct((L_pad, HOP_PAD), jnp.float32),
        grid=grid,
        in_specs=[row_spec(TOK_PAD),                               # upsampled token embeddings
                  row_spec(MEL_PAD),                               # CFM gaussian noise x0
                  pl.BlockSpec((tile_l, HOP_PAD), lambda i: (0, 0))]  # fade (used on tile 0 only)
                 + [full_spec(a) for a in weights],                # resident weights / biases
        out_specs=row_spec(HOP_PAD),
        compiler_params=pltpu.CompilerParams(
            dimension_semantics=("parallel",)),                    # lets v7x's 2 TCs split L
    )(emb_up_pad, x0_pad, fade_tile, *weights)


# ---------------------------------------------------------------------------
# Parameters (deterministic synthetic init, zero-padded to 128 lanes, bf16 matmul weights)
# ---------------------------------------------------------------------------

def init_params(key):
    ks = jax.random.split(key, 9)

    def w(k, shape, scale):
        return (scale * jax.random.normal(k, shape)).astype(jnp.float32)

    def pad2(a, rows, cols, dtype=jnp.bfloat16):
        out = jnp.zeros((rows, cols), jnp.float32).at[: a.shape[0], : a.shape[1]].set(a)
        return out.astype(dtype)

    embed    = w(ks[0], (VOCAB, TOK_DIM), 0.1)
    enc_w1   = w(ks[1], (TOK_DIM, ENC_HID), 0.2)
    enc_w2   = w(ks[2], (ENC_HID, MEL_DIM), 0.2)
    # estimator in_channels = 320 = x(80) + mu(80) + spk(80) + prompt_cond(80),
    # stored split by source so the concat never materializes; the prompt/cond block
    # multiplies an all-zero prompt_feat and is dropped from the kernel entirely.
    est_w_x   = w(ks[3], (MEL_DIM, MEL_DIM), 0.1)
    est_w_mu  = w(ks[4], (MEL_DIM, MEL_DIM), 0.1)
    est_w_spk = w(ks[5], (MEL_DIM, MEL_DIM), 0.1)
    spk_w     = w(ks[6], (160, MEL_DIM), 0.05)
    mel_w1    = w(ks[7], (MEL_DIM, WAV_HID), 0.15)
    wav_w     = w(ks[8], (WAV_HID, HOP), 0.15)

    return dict(
        embed   = jnp.zeros((VOCAB, TOK_PAD), jnp.float32).at[:, :TOK_DIM].set(embed),
        enc_w1  = pad2(enc_w1, TOK_PAD, ENC_PAD),
        enc_b1  = jnp.zeros((1, ENC_PAD), jnp.float32),
        enc_w2  = pad2(enc_w2, ENC_PAD, MEL_PAD),
        enc_b2  = jnp.zeros((1, MEL_PAD), jnp.float32),
        est_w_x   = pad2(est_w_x, MEL_PAD, MEL_PAD),
        est_w_mu  = pad2(est_w_mu, MEL_PAD, MEL_PAD),
        est_w_spk = est_w_spk,                 # used only in the 1-row glue precompute
        est_b     = jnp.zeros((1, MEL_PAD), jnp.float32),
        spk_w     = spk_w,
        mel_w1  = pad2(mel_w1, MEL_PAD, WAV_HID),
        mel_b1  = jnp.zeros((1, WAV_HID), jnp.float32),
        wav_w   = pad2(wav_w, WAV_HID, HOP_PAD),
    )


def _build_fade_tile(tile_l):
    # trim_fade exactly as registered in __init__: zeros(480) ++ (cos(linspace(pi,0,480))+1)/2,
    # laid out over the first 8 HOP-sized frames of the first grid tile (ones elsewhere).
    n = N_TRIM
    trim = np.zeros(2 * n, np.float32)
    trim[n:] = (np.cos(np.linspace(np.pi, 0.0, n)) + 1.0) / 2.0
    flat = np.ones(tile_l * HOP, np.float32)
    flat[: 2 * n] = trim                      # tile_l >= 8 guarantees 2*n <= tile_l*HOP
    tile = np.ones((tile_l, HOP_PAD), np.float32)
    tile[:, :HOP] = flat.reshape(tile_l, HOP)
    return jnp.asarray(tile)


# ---------------------------------------------------------------------------
# Forward (mirrors S3Token2Wav.forward at small synthetic scale)
# ---------------------------------------------------------------------------

def s3_token2wav_forward(params, speech_tokens, ref_wav, finalize=True, noise_key=None):
    """speech_tokens: (1, T) int32, ref_wav: (1, N) float32 (assumed already at 24 kHz)."""
    # TODO(synk): S3Tokenizer, torchaudio resampling and the real CAMPPlus x-vector network
    # have no clean Pallas equivalent; a mean-pooled dense speaker embedding surrogate is used.
    if not finalize:
        speech_tokens = speech_tokens[:, :-3]          # streaming: drop last 3 tokens
    toks = speech_tokens[0]

    # --- token embedding gather + 2x upsample-repeat (tiny gather glue) ---
    emb = params["embed"][toks]                        # (T, TOK_PAD)
    emb_up = jnp.repeat(emb, UPSAMPLE, axis=0)         # (L, TOK_PAD)
    L = emb_up.shape[0]

    # tile/pad the time axis: multiple of 8 sublanes, padded rows are sliced off at the end
    tile_l = min(MAX_TILE_L, _round_up(max(L, 1), 8))
    L_pad = _round_up(L, tile_l)
    emb_up_pad = jnp.zeros((L_pad, TOK_PAD), jnp.float32).at[:L].set(emb_up)

    # --- speaker embedding surrogate (CAMPPlus), 1-row glue ---
    n_frames = ref_wav.shape[1] // 160
    feat = jnp.mean(ref_wav[0, : n_frames * 160].reshape(n_frames, 160),
                    axis=0, keepdims=True)             # (1, 160)
    spk = jnp.tanh(feat @ params["spk_w"])             # (1, MEL_DIM)
    # loop- and L-invariant estimator row: spk @ W_spk + b (computed once, broadcast in-kernel)
    spk_c = (jnp.zeros((1, MEL_PAD), jnp.float32)
             .at[:, :MEL_DIM].set(spk @ params["est_w_spk"])) + params["est_b"]

    # --- CFM gaussian noise (matches original (L, MEL_DIM)), zero-padded ---
    # TODO(synk): the real ConditionalDecoder U-Net (causal convs + attention) is replaced by a
    # single dense tanh estimator per euler step, split per-source so no (L,320) concat exists.
    if noise_key is None:
        noise_key = jax.random.PRNGKey(42)
    noise = jax.random.normal(noise_key, (L, MEL_DIM), jnp.float32)
    x0_pad = jnp.zeros((L_pad, MEL_PAD), jnp.float32).at[:L, :MEL_DIM].set(noise)

    # --- trim_fade as a per-frame tile applied inside the kernel (first grid tile only) ---
    fade_tile = _build_fade_tile(tile_l)

    # --- one fused Pallas call: encoder -> conditioning -> euler CFM -> mel->wav -> fade ---
    # TODO(synk): HiFT ResBlocks, NSF harmonic source and ISTFT head are not reproduced; dense
    # per-frame synthesis with total upsample 8*5*3=120 only.
    frames = _fused_pallas(params, emb_up_pad, x0_pad, spk_c, fade_tile, tile_l)  # (L_pad, HOP_PAD)

    wav = frames[:L, :HOP].reshape(1, L * HOP)         # strip lane/time padding, flatten
    return wav


if __name__ == "__main__":
    key = jax.random.PRNGKey(0)
    pkey, tkey, wkey, nkey = jax.random.split(key, 4)
    params = init_params(pkey)

    speech_tokens = jax.random.randint(tkey, (1, 8), 0, VOCAB, dtype=jnp.int32)   # [B=1, T=8]
    ref_wav = 0.1 * jax.random.normal(wkey, (1, 3200), jnp.float32)               # [B=1, N]

    wav = s3_token2wav_forward(params, speech_tokens, ref_wav, finalize=True, noise_key=nkey)
    wav = jax.block_until_ready(wav)
    assert wav.shape == (1, 8 * UPSAMPLE * HOP)
    assert bool(jnp.all(jnp.isfinite(wav)))
    print("KERNEL_OK")
</pallas_src>

<mosaic_0001>
module attributes {stable_mosaic.version = 11 : i64} {
  func.func @_s3_fused_kernel(%arg0: i32, %arg1: memref<16x128xf32, #tpu.memory_space<vmem>>, %arg2: memref<16x128xf32, #tpu.memory_space<vmem>>, %arg3: memref<16x128xf32, #tpu.memory_space<vmem>>, %arg4: memref<128x128xbf16, #tpu.memory_space<vmem>>, %arg5: memref<1x128xf32, #tpu.memory_space<vmem>>, %arg6: memref<128x128xbf16, #tpu.memory_space<vmem>>, %arg7: memref<1x128xf32, #tpu.memory_space<vmem>>, %arg8: memref<128x128xbf16, #tpu.memory_space<vmem>>, %arg9: memref<1x128xf32, #tpu.memory_space<vmem>>, %arg10: memref<128x128xbf16, #tpu.memory_space<vmem>>, %arg11: memref<128x128xbf16, #tpu.memory_space<vmem>>, %arg12: memref<1x128xf32, #tpu.memory_space<vmem>>, %arg13: memref<128x128xbf16, #tpu.memory_space<vmem>>, %arg14: memref<16x128xf32, #tpu.memory_space<vmem>>) attributes {dimension_semantics = [#tpu.dimension_semantics<parallel>], iteration_bounds = array<i64: 1>, scalar_prefetch = 0 : i64, scratch_operands = 0 : i64, tpu.core_type = #tpu.core_type<tc>, window_params = [{transform_indices = @transform_0, window_bounds = array<i64: 16, 128>}, {transform_indices = @transform_1, window_bounds = array<i64: 16, 128>}, {pipeline_mode = #tpu.pipeline_mode<synchronous>, transform_indices = @transform_2, window_bounds = array<i64: 16, 128>}, {pipeline_mode = #tpu.pipeline_mode<synchronous>, transform_indices = @transform_3, window_bounds = array<i64: 128, 128>}, {pipeline_mode = #tpu.pipeline_mode<synchronous>, transform_indices = @transform_4, window_bounds = array<i64: 1, 128>}, {pipeline_mode = #tpu.pipeline_mode<synchronous>, transform_indices = @transform_5, window_bounds = array<i64: 128, 128>}, {pipeline_mode = #tpu.pipeline_mode<synchronous>, transform_indices = @transform_6, window_bounds = array<i64: 1, 128>}, {pipeline_mode = #tpu.pipeline_mode<synchronous>, transform_indices = @transform_7, window_bounds = array<i64: 128, 128>}, {pipeline_mode = #tpu.pipeline_mode<synchronous>, transform_indices = @transform_8, window_bounds = array<i64: 1, 128>}, {pipeline_mode = #tpu.pipeline_mode<synchronous>, transform_indices = @transform_9, window_bounds = array<i64: 128, 128>}, {pipeline_mode = #tpu.pipeline_mode<synchronous>, transform_indices = @transform_10, window_bounds = array<i64: 128, 128>}, {pipeline_mode = #tpu.pipeline_mode<synchronous>, transform_indices = @transform_11, window_bounds = array<i64: 1, 128>}, {pipeline_mode = #tpu.pipeline_mode<synchronous>, transform_indices = @transform_12, window_bounds = array<i64: 128, 128>}, {transform_indices = @transform_13, window_bounds = array<i64: 16, 128>}]} {
    %c0 = arith.constant 0 : index
    %c0_0 = arith.constant 0 : index
    %0 = vector.load %arg1[%c0, %c0_0] : memref<16x128xf32, #tpu.memory_space<vmem>>, vector<16x128xf32>
    %1 = arith.truncf %0 : vector<16x128xf32> to vector<16x128xbf16>
    %c0_1 = arith.constant 0 : index
    %c0_2 = arith.constant 0 : index
    %2 = vector.load %arg4[%c0_1, %c0_2] : memref<128x128xbf16, #tpu.memory_space<vmem>>, vector<128x128xbf16>
    %cst = arith.constant dense<0.000000e+00> : vector<16x128xf32>
    %3 = tpu.matmul %1, %2, %cst {dimension_numbers = #tpu.dot_dimension_numbers<[1], [0], [0], [1], [0, 0, 1, 1], [], []>} : vector<16x128xbf16>, vector<128x128xbf16>, vector<16x128xf32> -> vector<16x128xf32>
    %c0_3 = arith.constant 0 : index
    %c0_4 = arith.constant 0 : index
    %4 = vector.load %arg5[%c0_3, %c0_4] : memref<1x128xf32, #tpu.memory_space<vmem>>, vector<1x128xf32>
    %5 = vector.broadcast %4 : vector<1x128xf32> to vector<16x128xf32>
    %6 = arith.addf %3, %5 : vector<16x128xf32>
    %cst_5 = arith.constant 0.000000e+00 : f32
    %7 = vector.broadcast %cst_5 : f32 to vector<16x128xf32>
    %8 = arith.maximumf %6, %7 : vector<16x128xf32>
    %9 = arith.truncf %8 : vector<16x128xf32> to vector<16x128xbf16>
    %c0_6 = arith.constant 0 : index
    %c0_7 = arith.constant 0 : index
    %10 = vector.load %arg6[%c0_6, %c0_7] : memref<128x128xbf16, #tpu.memory_space<vmem>>, vector<128x128xbf16>
    %cst_8 = arith.constant dense<0.000000e+00> : vector<16x128xf32>
    %11 = tpu.matmul %9, %10, %cst_8 {dimension_numbers = #tpu.dot_dimension_numbers<[1], [0], [0], [1], [0, 0, 1, 1], [], []>} : vector<16x128xbf16>, vector<128x128xbf16>, vector<16x128xf32> -> vector<16x128xf32>
    %c0_9 = arith.constant 0 : index
    %c0_10 = arith.constant 0 : index
    %12 = vector.load %arg7[%c0_9, %c0_10] : memref<1x128xf32, #tpu.memory_space<vmem>>, vector<1x128xf32>
    %13 = vector.broadcast %12 : vector<1x128xf32> to vector<16x128xf32>
    %14 = arith.addf %11, %13 : vector<16x128xf32>
    %15 = arith.truncf %14 : vector<16x128xf32> to vector<16x128xbf16>
    %c0_11 = arith.constant 0 : index
    %c0_12 = arith.constant 0 : index
    %16 = vector.load %arg8[%c0_11, %c0_12] : memref<128x128xbf16, #tpu.memory_space<vmem>>, vector<128x128xbf16>
    %cst_13 = arith.constant dense<0.000000e+00> : vector<16x128xf32>
    %17 = tpu.matmul %15, %16, %cst_13 {dimension_numbers = #tpu.dot_dimension_numbers<[1], [0], [0], [1], [0, 0, 1, 1], [], []>} : vector<16x128xbf16>, vector<128x128xbf16>, vector<16x128xf32> -> vector<16x128xf32>
    %c0_14 = arith.constant 0 : index
    %c0_15 = arith.constant 0 : index
    %18 = vector.load %arg9[%c0_14, %c0_15] : memref<1x128xf32, #tpu.memory_space<vmem>>, vector<1x128xf32>
    %19 = vector.broadcast %18 : vector<1x128xf32> to vector<16x128xf32>
    %20 = arith.addf %17, %19 : vector<16x128xf32>
    %c0_16 = arith.constant 0 : index
    %c0_17 = arith.constant 0 : index
    %21 = vector.load %arg10[%c0_16, %c0_17] : memref<128x128xbf16, #tpu.memory_space<vmem>>, vector<128x128xbf16>
    %c0_18 = arith.constant 0 : index
    %c0_19 = arith.constant 0 : index
    %22 = vector.load %arg2[%c0_18, %c0_19] : memref<16x128xf32, #tpu.memory_space<vmem>>, vector<16x128xf32>
    %cst_20 = arith.constant 2.500000e-01 : f32
    %c0_i32 = arith.constant 0 : i32
    %23 = arith.truncf %22 : vector<16x128xf32> to vector<16x128xbf16>
    %cst_21 = arith.constant dense<0.000000e+00> : vector<16x128xf32>
    %24 = tpu.matmul %23, %21, %cst_21 {dimension_numbers = #tpu.dot_dimension_numbers<[1], [0], [0], [1], [0, 0, 1, 1], [], []>} : vector<16x128xbf16>, vector<128x128xbf16>, vector<16x128xf32> -> vector<16x128xf32>
    %25 = arith.addf %24, %20 : vector<16x128xf32>
    %26 = math.tanh %25 : vector<16x128xf32>
    %27 = vector.broadcast %cst_20 : f32 to vector<16x128xf32>
    %28 = arith.mulf %27, %26 : vector<16x128xf32>
    %29 = arith.addf %22, %28 : vector<16x128xf32>
    %c1_i32 = arith.constant 1 : i32
    %30 = arith.truncf %29 : vector<16x128xf32> to vector<16x128xbf16>
    %cst_22 = arith.constant dense<0.000000e+00> : vector<16x128xf32>
    %31 = tpu.matmul %30, %21, %cst_22 {dimension_numbers = #tpu.dot_dimension_numbers<[1], [0], [0], [1], [0, 0, 1, 1], [], []>} : vector<16x128xbf16>, vector<128x128xbf16>, vector<16x128xf32> -> vector<16x128xf32>
    %32 = arith.addf %31, %20 : vector<16x128xf32>
    %33 = math.tanh %32 : vector<16x128xf32>
    %34 = vector.broadcast %cst_20 : f32 to vector<16x128xf32>
    %35 = arith.mulf %34, %33 : vector<16x128xf32>
    %36 = arith.addf %29, %35 : vector<16x128xf32>
    %c2_i32 = arith.constant 2 : i32
    %37 = arith.truncf %36 : vector<16x128xf32> to vector<16x128xbf16>
    %cst_23 = arith.constant dense<0.000000e+00> : vector<16x128xf32>
    %38 = tpu.matmul %37, %21, %cst_23 {dimension_numbers = #tpu.dot_dimension_numbers<[1], [0], [0], [1], [0, 0, 1, 1], [], []>} : vector<16x128xbf16>, vector<128x128xbf16>, vector<16x128xf32> -> vector<16x128xf32>
    %39 = arith.addf %38, %20 : vector<16x128xf32>
    %40 = math.tanh %39 : vector<16x128xf32>
    %41 = vector.broadcast %cst_20 : f32 to vector<16x128xf32>
    %42 = arith.mulf %41, %40 : vector<16x128xf32>
    %43 = arith.addf %36, %42 : vector<16x128xf32>
    %c3_i32 = arith.constant 3 : i32
    %44 = arith.truncf %43 : vector<16x128xf32> to vector<16x128xbf16>
    %cst_24 = arith.constant dense<0.000000e+00> : vector<16x128xf32>
    %45 = tpu.matmul %44, %21, %cst_24 {dimension_numbers = #tpu.dot_dimension_numbers<[1], [0], [0], [1], [0, 0, 1, 1], [], []>} : vector<16x128xbf16>, vector<128x128xbf16>, vector<16x128xf32> -> vector<16x128xf32>
    %46 = arith.addf %45, %20 : vector<16x128xf32>
    %47 = math.tanh %46 : vector<16x128xf32>
    %48 = vector.broadcast %cst_20 : f32 to vector<16x128xf32>
    %49 = arith.mulf %48, %47 : vector<16x128xf32>
    %50 = arith.addf %43, %49 : vector<16x128xf32>
    %51 = arith.truncf %50 : vector<16x128xf32> to vector<16x128xbf16>
    %c0_25 = arith.constant 0 : index
    %c0_26 = arith.constant 0 : index
    %52 = vector.load %arg11[%c0_25, %c0_26] : memref<128x128xbf16, #tpu.memory_space<vmem>>, vector<128x128xbf16>
    %cst_27 = arith.constant dense<0.000000e+00> : vector<16x128xf32>
    %53 = tpu.matmul %51, %52, %cst_27 {dimension_numbers = #tpu.dot_dimension_numbers<[1], [0], [0], [1], [0, 0, 1, 1], [], []>} : vector<16x128xbf16>, vector<128x128xbf16>, vector<16x128xf32> -> vector<16x128xf32>
    %c0_28 = arith.constant 0 : index
    %c0_29 = arith.constant 0 : index
    %54 = vector.load %arg12[%c0_28, %c0_29] : memref<1x128xf32, #tpu.memory_space<vmem>>, vector<1x128xf32>
    %55 = vector.broadcast %54 : vector<1x128xf32> to vector<16x128xf32>
    %56 = arith.addf %53, %55 : vector<16x128xf32>
    %cst_30 = arith.constant 0.000000e+00 : f32
    %57 = vector.broadcast %cst_30 : f32 to vector<16x128xf32>
    %58 = arith.maximumf %56, %57 : vector<16x128xf32>
    %59 = arith.truncf %58 : vector<16x128xf32> to vector<16x128xbf16>
    %c0_31 = arith.constant 0 : index
    %c0_32 = arith.constant 0 : index
    %60 = vector.load %arg13[%c0_31, %c0_32] : memref<128x128xbf16, #tpu.memory_space<vmem>>, vector<128x128xbf16>
    %cst_33 = arith.constant dense<0.000000e+00> : vector<16x128xf32>
    %61 = tpu.matmul %59, %60, %cst_33 {dimension_numbers = #tpu.dot_dimension_numbers<[1], [0], [0], [1], [0, 0, 1, 1], [], []>} : vector<16x128xbf16>, vector<128x128xbf16>, vector<16x128xf32> -> vector<16x128xf32>
    %62 = math.tanh %61 : vector<16x128xf32>
    %c0_i32_34 = arith.constant 0 : i32
    %63 = arith.cmpi eq, %arg0, %c0_i32_34 : i32
    %64 = arith.extui %63 : i1 to i32
    %c0_i32_35 = arith.constant 0 : i32
    %65 = arith.cmpi ne, %64, %c0_i32_35 : i32
    scf.if %65 {
      %c0_38 = arith.constant 0 : index
      %c0_39 = arith.constant 0 : index
      %69 = vector.load %arg3[%c0_38, %c0_39] : memref<16x128xf32, #tpu.memory_space<vmem>>, vector<16x128xf32>
      %70 = arith.mulf %62, %69 : vector<16x128xf32>
      %c0_40 = arith.constant 0 : index
      %c0_41 = arith.constant 0 : index
      %71 = vector.load %arg14[%c0_40, %c0_41] : memref<16x128xf32, #tpu.memory_space<vmem>>, vector<16x128xf32>
      tpu.vector_store %arg14[%c0_40, %c0_41], %70 {strides = array<i32>} : memref<16x128xf32, #tpu.memory_space<vmem>>, vector<16x128xf32>,
    } else {
    }
    %c0_i32_36 = arith.constant 0 : i32
    %66 = arith.cmpi ne, %arg0, %c0_i32_36 : i32
    %67 = arith.extui %66 : i1 to i32
    %c0_i32_37 = arith.constant 0 : i32
    %68 = arith.cmpi ne, %67, %c0_i32_37 : i32
    scf.if %68 {
      %c0_38 = arith.constant 0 : index
      %c0_39 = arith.constant 0 : index
      %69 = vector.load %arg14[%c0_38, %c0_39] : memref<16x128xf32, #tpu.memory_space<vmem>>, vector<16x128xf32>
      tpu.vector_store %arg14[%c0_38, %c0_39], %62 {strides = array<i32>} : memref<16x128xf32, #tpu.memory_space<vmem>>, vector<16x128xf32>,
    } else {
    }
    return
  }
  func.func @transform_0(%arg0: i32) -> (i32, i32) {
    %c0_i32 = arith.constant 0 : i32
    %c0_i32_0 = arith.constant 0 : i32
    return %arg0, %c0_i32 : i32, i32
  }
  func.func @transform_1(%arg0: i32) -> (i32, i32) {
    %c0_i32 = arith.constant 0 : i32
    %c0_i32_0 = arith.constant 0 : i32
    return %arg0, %c0_i32 : i32, i32
  }
  func.func @transform_2(%arg0: i32) -> (i32, i32) {
    %c0_i32 = arith.constant 0 : i32
    %c0_i32_0 = arith.constant 0 : i32
    %c0_i32_1 = arith.constant 0 : i32
    return %c0_i32, %c0_i32_0 : i32, i32
  }
  func.func @transform_3(%arg0: i32) -> (i32, i32) {
    %c0_i32 = arith.constant 0 : i32
    %c0_i32_0 = arith.constant 0 : i32
    %c0_i32_1 = arith.constant 0 : i32
    return %c0_i32, %c0_i32_0 : i32, i32
  }
  func.func @transform_4(%arg0: i32) -> (i32, i32) {
    %c0_i32 = arith.constant 0 : i32
    %c0_i32_0 = arith.constant 0 : i32
    %c0_i32_1 = arith.constant 0 : i32
    return %c0_i32, %c0_i32_0 : i32, i32
  }
  func.func @transform_5(%arg0: i32) -> (i32, i32) {
    %c0_i32 = arith.constant 0 : i32
    %c0_i32_0 = arith.constant 0 : i32
    %c0_i32_1 = arith.constant 0 : i32
    return %c0_i32, %c0_i32_0 : i32, i32
  }
  func.func @transform_6(%arg0: i32) -> (i32, i32) {
    %c0_i32 = arith.constant 0 : i32
    %c0_i32_0 = arith.constant 0 : i32
    %c0_i32_1 = arith.constant 0 : i32
    return %c0_i32, %c0_i32_0 : i32, i32
  }
  func.func @transform_7(%arg0: i32) -> (i32, i32) {
    %c0_i32 = arith.constant 0 : i32
    %c0_i32_0 = arith.constant 0 : i32
    %c0_i32_1 = arith.constant 0 : i32
    return %c0_i32, %c0_i32_0 : i32, i32
  }
  func.func @transform_8(%arg0: i32) -> (i32, i32) {
    %c0_i32 = arith.constant 0 : i32
    %c0_i32_0 = arith.constant 0 : i32
    %c0_i32_1 = arith.constant 0 : i32
    return %c0_i32, %c0_i32_0 : i32, i32
  }
  func.func @transform_9(%arg0: i32) -> (i32, i32) {
    %c0_i32 = arith.constant 0 : i32
    %c0_i32_0 = arith.constant 0 : i32
    %c0_i32_1 = arith.constant 0 : i32
    return %c0_i32, %c0_i32_0 : i32, i32
  }
  func.func @transform_10(%arg0: i32) -> (i32, i32) {
    %c0_i32 = arith.constant 0 : i32
    %c0_i32_0 = arith.constant 0 : i32
    %c0_i32_1 = arith.constant 0 : i32
    return %c0_i32, %c0_i32_0 : i32, i32
  }
  func.func @transform_11(%arg0: i32) -> (i32, i32) {
    %c0_i32 = arith.constant 0 : i32
    %c0_i32_0 = arith.constant 0 : i32
    %c0_i32_1 = arith.constant 0 : i32
    return %c0_i32, %c0_i32_0 : i32, i32
  }
  func.func @transform_12(%arg0: i32) -> (i32, i32) {
    %c0_i32 = arith.constant 0 : i32
    %c0_i32_0 = arith.constant 0 : i32
    %c0_i32_1 = arith.constant 0 : i32
    return %c0_i32, %c0_i32_0 : i32, i32
  }
  func.func @transform_13(%arg0: i32) -> (i32, i32) {
    %c0_i32 = arith.constant 0 : i32
    %c0_i32_0 = arith.constant 0 : i32
    return %arg0, %c0_i32 : i32, i32
  }
}

</mosaic_0001>

<bundles_post_ra>
// kernel: tpu_custom_call.1
= control target key start
LH: loop header
LB: loop body
LE: loop exit
PB: predicated region body
PF: predicated region fallthrough
CT: control target
= control target key end

     0   :  { %18 = vsyncpa [#allocation3], 0  ;;  %s1491_s0 = inlined_call_operand.hbm [shape: f32[16,128], index: 0, kind: input, shape index: {}]   ;;  %s1492_s1 = inlined_call_operand.hbm [shape: f32[16,128], index: 1, kind: input, shape index: {}]   ;;  %s1493_s2 = inlined_call_operand.hbm [shape: f32[16,128], index: 2, kind: input, shape index: {}]   ;;  %s1494_s3 = inlined_call_operand.hbm [shape: bf16[128,128], index: 3, kind: input, shape index: {}]   ;;  %s1495_s4 = inlined_call_operand.vmem [shape: f32[1,128], index: 4, kind: input, shape index: {}]   ;;  %s1496_s5 = inlined_call_operand.hbm [shape: bf16[128,128], index: 5, kind: input, shape index: {}]   ;;  %s1497_s6 = inlined_call_operand.vmem [shape: f32[1,128], index: 6, kind: input, shape index: {}]   ;;  %s1498_s7 = inlined_call_operand.hbm [shape: bf16[128,128], index: 7, kind: input, shape index: {}]   ;;  %s1499_s8 = inlined_call_operand.vmem [shape: f32[1,128], index: 8, kind: input, shape index: {}]   ;;  %s1500_s9 = inlined_call_operand.hbm [shape: bf16[128,128], index: 9, kind: input, shape index: {}]   ;;  %s1501_s10 = inlined_call_operand.hbm [shape: bf16[128,128], index: 10, kind: input, shape index: {}]   ;;  %s1502_s11 = inlined_call_operand.vmem [shape: f32[1,128], index: 11, kind: input, shape index: {}]   ;;  %s1503_s12 = inlined_call_operand.hbm [shape: bf16[128,128], index: 12, kind: input, shape index: {}]   ;;  %s1504_s13 = inlined_call_operand.hbm [shape: f32[16,128], index: 13, kind: output, shape index: {}]  }
   0x1   :  { %19 = vsyncpa [#allocation6], 0 }
   0x2   :  { %20 = vsyncpa [#allocation9], 0 }
   0x3   :  { %21 = vsyncpa [#allocation12], 0 }
   0x4   :  { %22 = vsyncpa [#allocation15], 0 }
   0x5   :  { %23 = vsyncpa [#allocation4], 0  ;;  %s41_s27 = sshll.u32 %s1492_s1, 4  ;;  %s1323_s28 = smov [#allocation5]   ;;  %s42_s27 = int_to_ptr.hbm [resolvable:$true] %s41_s27 }
   0x6   :  { %s43_s29 = sshll.u32 %s1323_s28, 4  ;;  %s67_s15 = sshll.u32 %s1494_s3, 4  ;;  %s44_s29 = int_to_ptr.vmem [resolvable:$true] %s43_s29  ;;  %s68_s15 = int_to_ptr.hbm [resolvable:$true] %s67_s15 }
   0x7   :  { %s1324_s16 = smov 128   ;;  %s1325_s17 = smov 8  }
   0x8   :  { %49 = dma.hbm_to_vmem [thread:$0]  %s42_s27, 256, %s44_s29, [#allocation6], %s1324_s16, %s1324_s16, %s1325_s17  }
   0x9   :  { %s1326_s18 = smov [#allocation8]   ;;  %s1327_s20 = smov 64  }
   0xa   :  { %s69_s19 = sshll.u32 %s1326_s18, 4  ;;  %s1328_s1 = smov 4   ;;  %s70_s19 = int_to_ptr.vmem [resolvable:$true] %s69_s19 }
   0xb   :  { %75 = dma.hbm_to_vmem [thread:$0]  %s68_s15, 1024, %s70_s19, [#allocation9], %s1327_s20, %s1327_s20, %s1328_s1  }
   0xc   :  { %s97_s3 = sshll.u32 %s1498_s7, 4  ;;  %s1329_s23 = smov [#allocation11]   ;;  %s98_s3 = int_to_ptr.hbm [resolvable:$true] %s97_s3 }
   0xd   :  { %s99_s24 = sshll.u32 %s1329_s23, 4  ;;  %s125_s27 = sshll.u32 %s1501_s10, 4  ;;  %s100_s24 = int_to_ptr.vmem [resolvable:$true] %s99_s24  ;;  %s126_s27 = int_to_ptr.hbm [resolvable:$true] %s125_s27 }
   0xe   :  { %105 = dma.hbm_to_vmem [thread:$0]  %s98_s3, 1024, %s100_s24, [#allocation12], %s1327_s20, %s1327_s20, %s1328_s1  }
   0xf   :  { %s1330_s28 = smov [#allocation14]   ;;  %s28_s15 = sshll.u32 %s1491_s0, 4  ;;  %s29_s15 = int_to_ptr.hbm [resolvable:$true] %s28_s15 }
  0x10   :  { %s127_s29 = sshll.u32 %s1330_s28, 4  ;;  %s54_s10 = sshll.u32 %s1493_s2, 4  ;;  %s128_s29 = int_to_ptr.vmem [resolvable:$true] %s127_s29  ;;  %s55_s10 = int_to_ptr.hbm [resolvable:$true] %s54_s10 }
  0x11   :  { %133 = dma.hbm_to_vmem [thread:$0]  %s126_s27, 1024, %s128_s29, [#allocation15], %s1327_s20, %s1327_s20, %s1328_s1  }
  0x12   :  { %s1331_s19 = smov [#allocation2]   ;;  %s1332_s22 = smov [#allocation7]  }
  0x13   :  { %s30_s21 = sshll.u32 %s1331_s19, 4  ;;  %s56_s0 = sshll.u32 %s1332_s22, 4  ;;  %s31_s21 = int_to_ptr.vmem [resolvable:$true] %s30_s21  ;;  %s57_s0 = int_to_ptr.vmem [resolvable:$true] %s56_s0 }
  0x14   :  { %36 = dma.hbm_to_vmem [thread:$0]  %s29_s15, 256, %s31_s21, [#allocation3], %s1324_s16, %s1324_s16, %s1325_s17  }
  0x15   :  { %s82_s24 = sshll.u32 %s1496_s5, 4  ;;  %s112_s26 = sshll.u32 %s1500_s9, 4  ;;  %s83_s24 = int_to_ptr.hbm [resolvable:$true] %s82_s24  ;;  %s113_s26 = int_to_ptr.hbm [resolvable:$true] %s112_s26 }
  0x16   :  { %62 = dma.hbm_to_vmem [thread:$0]  %s55_s10, 256, %s57_s0, [#allocation6], %s1324_s16, %s1324_s16, %s1325_s17  }
  0x17   :  { %s1333_s27 = smov [#allocation10]   ;;  %s1334_s29 = smov [#allocation13]  }
  0x18   :  { %s84_s28 = sshll.u32 %s1333_s27, 4  ;;  %s114_s5 = sshll.u32 %s1334_s29, 4  ;;  %s85_s28 = int_to_ptr.vmem [resolvable:$true] %s84_s28  ;;  %s115_s5 = int_to_ptr.vmem [resolvable:$true] %s114_s5 }
  0x19   :  { %90 = dma.hbm_to_vmem [thread:$0]  %s83_s24, 1024, %s85_s28, [#allocation9], %s1327_s20, %s1327_s20, %s1328_s1  }
  0x1a   :  { %s140_s15 = sshll.u32 %s1503_s12, 4  ;;  %s1335_s9 = smov [#allocation16]   ;;  %s141_s15 = int_to_ptr.hbm [resolvable:$true] %s140_s15 }
  0x1b   :  { %120 = dma.hbm_to_vmem [thread:$0]  %s113_s26, 1024, %s115_s5, [#allocation12], %s1327_s20, %s1327_s20, %s1328_s1  }
  0x1c   :  { %s142_s7 = sshll.u32 %s1335_s9, 4  ;;  %s143_s7 = int_to_ptr.vmem [resolvable:$true] %s142_s7 }
  0x1d   :  { %148 = dma.hbm_to_vmem [thread:$0]  %s141_s15, 1024, %s143_s7, [#allocation15], %s1327_s20, %s1327_s20, %s1328_s1  }
  0x1e   :  { %1311 = dma.done.wait [#allocation3], 256  }
  0x1f   :  { %1312 = vsyncadd [#allocation3], 4294967040 }
  0x20   :  { %1313 = dma.done.wait [#allocation6], 512  }
  0x21   :  { %1314 = vsyncadd [#allocation6], 4294966784 }
  0x22   :  { %1315 = dma.done.wait [#allocation9], 2048  }
  0x23   :  { %1316 = vsyncadd [#allocation9], 4294965248 }
  0x24   :  { %1317 = dma.done.wait [#allocation12], 2048  }
  0x25   :  { %1318 = vsyncadd [#allocation12], 4294965248 }
  0x26   :  { %1319 = dma.done.wait [#allocation15], 2048  }
  0x27   :  { %1320 = vsyncadd [#allocation15], 4294965248  ;;  %v992_v0 = vld [vmem:[#allocation8 + $0x38] sm:$0xff]  ;;  %v991_v1 = vld [vmem:[#allocation8 + $0x30] sm:$0xff]  ;;  %s1336_s19 = smov [#allocation17]   ;;  %s776_s0 = sshll.u32 %s1504_s13, 4  ;;  %s777_s0 = int_to_ptr.hbm [resolvable:$true] %s776_s0 }
  0x28   :  { %256 = vmatpush.bf16.msra.mxu0 %v992_v0  ;;  %v1000_v2 = vld [vmem:[#allocation10 + $0x38] sm:$0xff]  ;;  %v999_v3 = vld [vmem:[#allocation10 + $0x30] sm:$0xff]  ;;  %v990_v4 = vld [vmem:[#allocation8 + $0x28] sm:$0xff]  ;;  %s774_s21 = sshll.u32 %s1336_s19, 4  ;;  %s775_s21 = int_to_ptr.vmem [resolvable:$true] %s774_s21 }
  0x29   :  { %341 = vmatpush.bf16.msra.mxu1 %v1000_v2  ;;  %v998_v5 = vld [vmem:[#allocation10 + $0x28] sm:$0xff]  ;;  %v989_v6 = vld [vmem:[#allocation8 + $0x20] sm:$0xff]  ;;  %v988_v8 = vld [vmem:[#allocation8 + $0x18] sm:$0xff] }
  0x2a   :  { %v997_v7 = vld [vmem:[#allocation10 + $0x20] sm:$0xff]  ;;  %v987_v9 = vld [vmem:[#allocation8 + $0x10] sm:$0xff]  ;;  %v986_v10 = vld [vmem:[#allocation8 + $0x8] sm:$0xff] }
  0x2b   :  { %v985_v11 = vld [vmem:[#allocation8] sm:$0xff]  ;;  %v185_v12 = vld [vmem:[#allocation2] sm:$0xff]  ;;  %v186_v13 = vld [vmem:[#allocation2 + $0x8] sm:$0xff] }
  0x2c   :  { %257 = vmatpush.bf16.msra.mxu0 %v991_v1  ;;  %v187_v14 = vpack.c.bf16 %v186_v13, %v185_v12  ;;  %v996_v15 = vld [vmem:[#allocation10 + $0x18] sm:$0xff]  ;;  %v995_v16 = vld [vmem:[#allocation10 + $0x10] sm:$0xff]  ;;  %v994_v17 = vld [vmem:[#allocation10 + $0x8] sm:$0xff] }
  0x2d   :  { %342 = vmatpush.bf16.msra.mxu1 %v999_v3  ;;  %v993_v18 = vld [vmem:[#allocation10] sm:$0xff]  ;;  %v1016_v19 = vld [vmem:[#allocation13 + $0x38] sm:$0xff]  ;;  %v1015_v21 = vld [vmem:[#allocation13 + $0x30] sm:$0xff] }
  0x2e   :  { %v1008_v20 = vld [vmem:[#allocation11 + $0x38] sm:$0xff]  ;;  %505 = vmatpush.bf16.msra.mxu3 %v1016_v19  ;;  %v1007_v22 = vld [vmem:[#allocation11 + $0x30] sm:$0xff]  ;;  %v1014_v23 = vld [vmem:[#allocation13 + $0x28] sm:$0xff] }
  0x2f   :  { %424 = vmatpush.bf16.msra.mxu2 %v1008_v20  ;;  %v1006_v24 = vld [vmem:[#allocation11 + $0x28] sm:$0xff]  ;;  %v1013_v25 = vld [vmem:[#allocation13 + $0x20] sm:$0xff]  ;;  %v1012_v27 = vld [vmem:[#allocation13 + $0x18] sm:$0xff] }
  0x30   :  { %258 = vmatpush.bf16.msra.mxu0 %v990_v4  ;;  %v1005_v26 = vld [vmem:[#allocation11 + $0x20] sm:$0xff]  ;;  %v1004_v28 = vld [vmem:[#allocation11 + $0x18] sm:$0xff]  ;;  %v1011_v30 = vld [vmem:[#allocation13 + $0x10] sm:$0xff] }
  0x31   :  { %343 = vmatpush.bf16.msra.mxu1 %v998_v5  ;;  %v1047_v31 = vld [vmem:[%s1495_s4] ss:$0 sm:$0xff]  ;;  %v1010_v38 = vld [vmem:[#allocation13 + $0x8] sm:$0xff]  ;;  %v1009_v40 = vld [vmem:[#allocation13] sm:$0xff] }
  0x32   :  { %506 = vmatpush.bf16.msra.mxu3 %v1015_v21  ;;  %v1003_v39 = vld [vmem:[#allocation11 + $0x10] sm:$0xff]  ;;  %v454_v41 = vld [vmem:[#allocation5] sm:$0xff]  ;;  %v1002_v42 = vld [vmem:[#allocation11 + $0x8] sm:$0xff] }
  0x33   :  { %425 = vmatpush.bf16.msra.mxu2 %v1007_v22  ;;  %v455_v43 = vld [vmem:[#allocation5 + $0x8] sm:$0xff]  ;;  %v1001_v45 = vld [vmem:[#allocation11] sm:$0xff]  ;;  %v1048_v47 = vld [vmem:[%s1497_s6] ss:$0 sm:$0xff] }
  0x34   :  { %259 = vmatpush.bf16.msra.mxu0 %v989_v6  ;;  %v456_v44 = vpack.c.bf16 %v455_v43, %v454_v41  ;;  %v1049_v52 = vld [vmem:[%s1499_s8] ss:$0 sm:$0xff] }
  0x35   :  { %344 = vmatpush.bf16.msra.mxu1 %v997_v7 }
  0x36   :  { %507 = vmatpush.bf16.msra.mxu3 %v1014_v23 }
  0x37   :  { %426 = vmatpush.bf16.msra.mxu2 %v1006_v24 }
  0x38   :  { %260 = vmatpush.bf16.msra.mxu0 %v988_v8 }
  0x39   :  { %345 = vmatpush.bf16.msra.mxu1 %v996_v15  ;;  %v1024_v15 = vld [vmem:[#allocation14 + $0x38] sm:$0xff] }
  0x3a   :  { %508 = vmatpush.bf16.msra.mxu3 %v1013_v25 }
  0x3b   :  { %427 = vmatpush.bf16.msra.mxu2 %v1005_v26 }
  0x3c   :  { %261 = vmatpush.bf16.msra.mxu0 %v987_v9 }
  0x3d   :  { %346 = vmatpush.bf16.msra.mxu1 %v995_v16  ;;  %v1023_v16 = vld [vmem:[#allocation14 + $0x30] sm:$0xff] }
  0x3e   :  { %509 = vmatpush.bf16.msra.mxu3 %v1012_v27 }
  0x3f   :  { %428 = vmatpush.bf16.msra.mxu2 %v1004_v28  ;;  %v1022_v28 = vld [vmem:[#allocation14 + $0x28] sm:$0xff] }
  0x40   :  { %262 = vmatpush.bf16.msra.mxu0 %v986_v10 }
  0x41   :  { %347 = vmatpush.bf16.msra.mxu1 %v994_v17 }
  0x42   :  { %510 = vmatpush.bf16.msra.mxu3 %v1011_v30 }
  0x43   :  { %429 = vmatpush.bf16.msra.mxu2 %v1003_v39 }
  0x44   :  { %263 = vmatpush.bf16.msra.mxu0 %v985_v11 }
  0x45   :  { %348 = vmatpush.bf16.msra.mxu1 %v993_v18 }
  0x46   :  { %511 = vmatpush.bf16.msra.mxu3 %v1010_v38 }
  0x47   :  { %264 = vmatmul.bf16.vlgmr.msra.gmra.mxu0 %v187_v14  ;;  %430 = vmatpush.bf16.msra.mxu2 %v1002_v42 }
  0x48   :  { %526 = vmatpush.bf16.msrb.mxu0 %v1016_v19 }
  0x49   :  { %547 = vmatpush.bf16.msrb.mxu1 %v1016_v19 }
  0x4a   :  { %512 = vmatpush.bf16.msra.mxu3 %v1009_v40 }
  0x4b   :  { %431 = vmatpush.bf16.msra.mxu2 %v1001_v45 }
  0x4c   :  { %527 = vmatpush.bf16.msrb.mxu0 %v1015_v21 }
  0x4d   :  { %548 = vmatpush.bf16.msrb.mxu1 %v1015_v21  ;;  %513 = vmatmul.bf16.vlgmr.msra.gmra.mxu3 %v456_v44 }
  0x4e   :  { %657 = vmatpush.bf16.msrb.mxu3 %v1024_v15 }
  0x4f   :  { %568 = vmatpush.bf16.msrb.mxu2 %v1016_v19 }
  0x50   :  { %528 = vmatpush.bf16.msrb.mxu0 %v1014_v23 }
  0x51   :  { %549 = vmatpush.bf16.msrb.mxu1 %v1014_v23 }
  0x52   :  { %658 = vmatpush.bf16.msrb.mxu3 %v1023_v16 }
  0x53   :  { %569 = vmatpush.bf16.msrb.mxu2 %v1015_v21 }
  0x54   :  { %529 = vmatpush.bf16.msrb.mxu0 %v1013_v25 }
  0x55   :  { %550 = vmatpush.bf16.msrb.mxu1 %v1013_v25 }
  0x56   :  { %659 = vmatpush.bf16.msrb.mxu3 %v1022_v28 }
  0x57   :  { %570 = vmatpush.bf16.msrb.mxu2 %v1014_v23 }
  0x58   :  { %530 = vmatpush.bf16.msrb.mxu0 %v1012_v27 }
  0x59   :  { %551 = vmatpush.bf16.msrb.mxu1 %v1012_v27 }
  0x5b   :  { %571 = vmatpush.bf16.msrb.mxu2 %v1013_v25 }
  0x5c   :  { %531 = vmatpush.bf16.msrb.mxu0 %v1011_v30 }
  0x5d   :  { %552 = vmatpush.bf16.msrb.mxu1 %v1011_v30 }
  0x5f   :  { %572 = vmatpush.bf16.msrb.mxu2 %v1012_v27 }
  0x60   :  { %532 = vmatpush.bf16.msrb.mxu0 %v1010_v38 }
  0x61   :  { %553 = vmatpush.bf16.msrb.mxu1 %v1010_v38 }
  0x63   :  { %573 = vmatpush.bf16.msrb.mxu2 %v1011_v30  ;;  %v1020_v30 = vld [vmem:[#allocation14 + $0x18] sm:$0xff] }
  0x64   :  { %533 = vmatpush.bf16.msrb.mxu0 %v1009_v40 }
  0x65   :  { %554 = vmatpush.bf16.msrb.mxu1 %v1009_v40 }
  0x67   :  { %574 = vmatpush.bf16.msrb.mxu2 %v1010_v38  ;;  %v1029_v38 = vld [vmem:[#allocation16 + $0x20] sm:$0xff] }
  0x6b   :  { %575 = vmatpush.bf16.msrb.mxu2 %v1009_v40 }
  0xc4   :  { %v265_v29 = vpop.f32.mrf.mxu0 }
  0xc5   :  { %v266_v32 = vadd.f32 %v1047_v31, %v265_v29  ;;  %v1021_v29 = vld [vmem:[#allocation14 + $0x20] sm:$0xff] }
  0xc6   :  { %660 = vmatpush.bf16.msrb.mxu3 %v1021_v29 }
  0xc7   :  { %v270_v35 = vmax.f32 %v266_v32, 0.0  ;;  %v1018_v32 = vld [vmem:[#allocation14 + $0x8] sm:$0xff] }
  0xca   :  { %661 = vmatpush.bf16.msrb.mxu3 %v1020_v30 }
  0xcc   :  { %v267_v33 = vpop.f32.mrf.mxu0 }
  0xcd   :  { %v268_v34 = vadd.f32 %v1047_v31, %v267_v33  ;;  %v1019_v31 = vld [vmem:[#allocation14 + $0x10] sm:$0xff]  ;;  %v1017_v33 = vld [vmem:[#allocation14] sm:$0xff] }
  0xce   :  { %662 = vmatpush.bf16.msrb.mxu3 %v1019_v31 }
  0xcf   :  { %v271_v36 = vmax.f32 %v268_v34, 0.0  ;;  %v1032_v34 = vld [vmem:[#allocation16 + $0x38] sm:$0xff] }
  0xd0   :  { %v514_v53 = vpop.f32.mrf.mxu3  ;;  %738 = vmatpush.bf16.msra.mxu0 %v1032_v34 }
  0xd1   :  { %v272_v37 = vpack.c.bf16 %v271_v36, %v270_v35  ;;  %v1031_v35 = vld [vmem:[#allocation16 + $0x30] sm:$0xff]  ;;  %v1030_v36 = vld [vmem:[#allocation16 + $0x28] sm:$0xff] }
  0xd2   :  { %663 = vmatpush.bf16.msrb.mxu3 %v1018_v32 }
  0xd3   :  { %349 = vmatmul.bf16.vlgmr.msra.gmra.mxu1 %v272_v37 }
  0xd4   :  { %739 = vmatpush.bf16.msra.mxu0 %v1031_v35 }
  0xd6   :  { %664 = vmatpush.bf16.msrb.mxu3 %v1017_v33 }
  0xd8   :  { %v516_v59 = vpop.f32.mrf.mxu3  ;;  %740 = vmatpush.bf16.msra.mxu0 %v1030_v36 }
  0xdc   :  { %741 = vmatpush.bf16.msra.mxu0 %v1029_v38 }
 0x150   :  { %v350_v46 = vpop.f32.mrf.mxu1 }
 0x151   :  { %v351_v49 = vadd.f32 %v1048_v47, %v350_v46 }
 0x158   :  { %v352_v48 = vpop.f32.mrf.mxu1 }
 0x159   :  { %v353_v50 = vadd.f32 %v1048_v47, %v352_v48 }
 0x15b   :  { %v355_v51 = vpack.c.bf16 %v353_v50, %v351_v49  ;;  %v1028_v49 = vld [vmem:[#allocation16 + $0x18] sm:$0xff]  ;;  %v1027_v50 = vld [vmem:[#allocation16 + $0x10] sm:$0xff] }
 0x15c   :  { %742 = vmatpush.bf16.msra.mxu0 %v1028_v49 }
 0x15d   :  { %432 = vmatmul.bf16.vlgmr.msra.gmra.mxu2 %v355_v51  ;;  %v1026_v51 = vld [vmem:[#allocation16 + $0x8] sm:$0xff] }
 0x160   :  { %743 = vmatpush.bf16.msra.mxu0 %v1027_v50 }
 0x164   :  { %744 = vmatpush.bf16.msra.mxu0 %v1026_v51 }
 0x1e0   :  { %v433_v54 = vpop.f32.mrf.mxu2 }
 0x1e1   :  { %v1470_v55 = vadd.f32 %v1049_v52, %v433_v54  ;;  %v1050_v54 = vld [vmem:[%s1502_s11] ss:$0 sm:$0xff] }
 0x1e3   :  { %v515_v56 = vadd.f32 %v514_v53, %v1470_v55 }
 0x1e5   :  { %1051 = vtanh.f32 %v515_v56 }
 0x1e8   :  { %v435_v57 = vpop.f32.mrf.mxu2 }
 0x1e9   :  { %v1473_v58 = vadd.f32 %v1049_v52, %v435_v57  ;;  %v1025_v52 = vld [vmem:[#allocation16] sm:$0xff] }
 0x1ea   :  { %745 = vmatpush.bf16.msra.mxu0 %v1025_v52 }
 0x1eb   :  { %v517_v60 = vadd.f32 %v516_v59, %v1473_v58  ;;  %v1052_v61 = vpop.eup %1051 }
 0x1ec   :  { %v521_v62 = vmul.f32 0.25, %v1052_v61 }
 0x1ed   :  { %1053 = vtanh.f32 %v517_v60 }
 0x1ee   :  { %v523_v1 = vadd.f32 %v521_v62, %v454_v41  ;;  %v758_v62 = vld [vmem:[#allocation7] sm:$0xff] }
 0x1f3   :  { %v1054_v63 = vpop.eup %1053 }
 0x1f4   :  { %v522_v0 = vmul.f32 0.25, %v1054_v63 }
 0x1f6   :  { %v524_v2 = vadd.f32 %v522_v0, %v455_v43 }
 0x1f8   :  { %v525_v3 = vpack.c.bf16 %v524_v2, %v523_v1 }
 0x1fa   :  { %534 = vmatmul.bf16.vlgmr.msrb.gmra.mxu0 %v525_v3 }
 0x277   :  { %v535_v4 = vpop.f32.mrf.mxu0 }
 0x278   :  { %v536_v5 = vadd.f32 %v535_v4, %v1470_v55 }
 0x27a   :  { %1055 = vtanh.f32 %v536_v5 }
 0x27f   :  { %v537_v6 = vpop.f32.mrf.mxu0 }
 0x280   :  { %v538_v7 = vadd.f32 %v537_v6, %v1473_v58  ;;  %v1056_v8 = vpop.eup %1055 }
 0x281   :  { %v542_v9 = vmul.f32 0.25, %v1056_v8 }
 0x282   :  { %1057 = vtanh.f32 %v538_v7 }
 0x283   :  { %v544_v12 = vadd.f32 %v542_v9, %v523_v1 }
 0x288   :  { %v1058_v10 = vpop.eup %1057 }
 0x289   :  { %v543_v11 = vmul.f32 0.25, %v1058_v10 }
 0x28b   :  { %v545_v13 = vadd.f32 %v543_v11, %v524_v2  ;;  %v759_v2 = vld [vmem:[#allocation7 + $0x8] sm:$0xff] }
 0x28d   :  { %v546_v14 = vpack.c.bf16 %v545_v13, %v544_v12 }
 0x28f   :  { %555 = vmatmul.bf16.vlgmr.msrb.gmra.mxu1 %v546_v14 }
 0x30c   :  { %v556_v17 = vpop.f32.mrf.mxu1 }
 0x30d   :  { %v557_v18 = vadd.f32 %v556_v17, %v1470_v55 }
 0x30f   :  { %1059 = vtanh.f32 %v557_v18 }
 0x314   :  { %v558_v19 = vpop.f32.mrf.mxu1 }
 0x315   :  { %v559_v20 = vadd.f32 %v558_v19, %v1473_v58  ;;  %v1060_v21 = vpop.eup %1059 }
 0x316   :  { %v563_v22 = vmul.f32 0.25, %v1060_v21 }
 0x317   :  { %1061 = vtanh.f32 %v559_v20 }
 0x318   :  { %v565_v25 = vadd.f32 %v563_v22, %v544_v12 }
 0x31d   :  { %v1062_v23 = vpop.eup %1061 }
 0x31e   :  { %v564_v24 = vmul.f32 0.25, %v1062_v23 }
 0x320   :  { %v566_v26 = vadd.f32 %v564_v24, %v545_v13 }
 0x322   :  { %v567_v27 = vpack.c.bf16 %v566_v26, %v565_v25 }
 0x324   :  { %576 = vmatmul.bf16.vlgmr.msrb.gmra.mxu2 %v567_v27 }
 0x3a7   :  { %v577_v37 = vpop.f32.mrf.mxu2 }
 0x3a8   :  { %v578_v39 = vadd.f32 %v577_v37, %v1470_v55 }
 0x3aa   :  { %1063 = vtanh.f32 %v578_v39 }
 0x3af   :  { %v579_v40 = vpop.f32.mrf.mxu2 }
 0x3b0   :  { %v580_v41 = vadd.f32 %v579_v40, %v1473_v58  ;;  %v1064_v42 = vpop.eup %1063 }
 0x3b1   :  { %v584_v43 = vmul.f32 0.25, %v1064_v42 }
 0x3b2   :  { %1065 = vtanh.f32 %v580_v41 }
 0x3b3   :  { %v586_v46 = vadd.f32 %v584_v43, %v565_v25 }
 0x3b8   :  { %v1066_v44 = vpop.eup %1065 }
 0x3b9   :  { %v585_v45 = vmul.f32 0.25, %v1066_v44 }
 0x3bb   :  { %v587_v47 = vadd.f32 %v585_v45, %v566_v26 }
 0x3bd   :  { %v588_v48 = vpack.c.bf16 %v587_v47, %v586_v46 }
 0x3bf   :  { %665 = vmatmul.bf16.vlgmr.msrb.gmra.mxu3 %v588_v48 }
 0x442   :  { %v666_v53 = vpop.f32.mrf.mxu3 }
 0x443   :  { %v667_v55 = vadd.f32 %v1050_v54, %v666_v53 }
 0x445   :  { %v671_v58 = vmax.f32 %v667_v55, 0.0 }
 0x44a   :  { %v668_v56 = vpop.f32.mrf.mxu3 }
 0x44b   :  { %v669_v57 = vadd.f32 %v1050_v54, %v668_v56 }
 0x44d   :  { %v672_v59 = vmax.f32 %v669_v57, 0.0 }
 0x44f   :  { %v673_v60 = vpack.c.bf16 %v672_v59, %v671_v58 }
 0x451   :  { %746 = vmatmul.bf16.vlgmr.msra.gmra.mxu0 %v673_v60 }
 0x4ce   :  { %v747_v61 = vpop.f32.mrf.mxu0 }
 0x4cf   :  { %1067 = vtanh.f32 %v747_v61 }
 0x4d5   :  { %v1068_v63 = vpop.eup %1067 }
 0x4d6   :  { %v760_v0 = vmul.f32 %v1068_v63, %v758_v62  ;;  %v749_v1 = vpop.f32.mrf.mxu0 }
 0x4d7   :  { %1069 = vtanh.f32 %v749_v1 }
 0x4d8   :  { %762 = vst [vmem:[#allocation17] sm:$0xff] %v760_v0 }
 0x4dd   :  { %v1070_v3 = vpop.eup %1069 }
 0x4de   :  { %v761_v4 = vmul.f32 %v1070_v3, %v759_v2 }
 0x4e0   :  { %763 = vst [vmem:[#allocation17 + $0x8] sm:$0xff] %v761_v4 }
 0x4e1   :  { %782 = dma.vmem_to_hbm [thread:$0]  %s775_s21, 256, %s777_s0, [#allocation4], %s1324_s16, %s1324_s16, %s1325_s17  }
 0x4e2   :  { %1321 = dma.done.wait [#allocation4], 256  }
 0x4e3   :  { %1322 = vsyncadd [#allocation4], 4294967040 }
 0x4e4   :  { %787 = vsyncpa [#allocation3], 1 }
 0x4e5   :  { %788 = vsyncpa [#allocation6], 1 }
 0x4e6   :  { %789 = vsyncpa [#allocation9], 1 }
 0x4e7   :  { %790 = vsyncpa [#allocation12], 1 }
 0x4e8   :  { %791 = vsyncpa [#allocation15], 1 }
 0x4e9   :  { %792 = vsyncpa [#allocation4], 1 }

</bundles_post_ra>
